<compile_context>
chip_gen: v7x
topology: tpu7x:2x2x1
jax: 0.10.0
libtpu: 0.0.40
codegen_flags: <defaults>
</compile_context>

<pallas_src>
import functools

import jax
import jax.numpy as jnp
from jax.experimental import pallas as pl
from jax.experimental.pallas import tpu as pltpu


_VMEM_TILE_BUDGET = 36 * 1024 * 1024   # what we size tiles against
_VMEM_LIMIT_BYTES = 48 * 1024 * 1024   # explicit scoped-VMEM limit (safe on v5e/v6e/v7x)


def _round_up(a, b):
    return pl.cdiv(a, b) * b


def prepare_adapter_weights(w1, w2, compute_dtype=None):
    """One-time weight prep (do this at parameter-load time, not per call).

    w1: (c_in, hidden), w2: (hidden, c_in)  -- already transposed vs nn.Linear.
    Pads the hidden (reduction) dim to a multiple of 128 so the intermediate
    activation tile is lane-dense on the MXU.  Zero padding is exact:
    relu(x @ 0) == 0 and the zero rows of W2 contribute nothing.
    Optionally casts to a narrower MXU dtype (e.g. bf16).
    """
    c_in, hidden = w1.shape
    assert w2.shape == (hidden, c_in)
    hidden_p = _round_up(hidden, 128)
    if hidden_p != hidden:
        w1 = jnp.pad(w1, ((0, 0), (0, hidden_p - hidden)))
        w2 = jnp.pad(w2, ((0, hidden_p - hidden), (0, 0)))
    if compute_dtype is not None:
        w1 = w1.astype(compute_dtype)
        w2 = w2.astype(compute_dtype)
    return w1, w2


def adapter_kernel(x_ref, w1_ref, w2_ref, o_ref, *, ratio):
    """Fused Linear -> ReLU -> Linear -> residual blend on one (tm, c_in) tile."""
    x_nat = x_ref[...]
    w1 = w1_ref[...]
    x = x_nat.astype(w1.dtype)                               # feed MXU the weight dtype
    h = jnp.dot(x, w1, preferred_element_type=jnp.float32)   # f32 accumulation
    h = jnp.maximum(h, 0.0).astype(w2_ref.dtype)             # second matmul operands native
    y = jnp.dot(h, w2_ref[...], preferred_element_type=jnp.float32)
    xf = x_nat.astype(jnp.float32)                           # elementwise epilogue in f32
    # ratio * y + (1 - ratio) * x  ==  x + ratio * (y - x)   (one fewer VPU mul)
    o_ref[...] = (xf + ratio * (y - xf)).astype(o_ref.dtype)


def _choose_row_tile(m, c_in, hidden_p, x_bytes, w_bytes, sublane, block_rows):
    """Largest sublane-aligned row tile that fits the VMEM budget."""
    # Weights: two matrices, double-buffered by the pipeline (constant index_map,
    # but we budget conservatively rather than relying on single-buffering).
    weight_bytes = 2 * 2 * (c_in * hidden_p) * w_bytes
    # Per-row cost: double-buffered x tile + double-buffered out tile
    # + f32 hidden intermediate + f32 epilogue temp.
    per_row = 2 * c_in * x_bytes + 2 * c_in * x_bytes + hidden_p * 4 + c_in * 4
    avail = max(_VMEM_TILE_BUDGET - weight_bytes, per_row * sublane)
    tm = max((avail // per_row) // sublane * sublane, sublane)
    tm = min(tm, _round_up(block_rows, sublane), _round_up(m, sublane))
    # Give both v7x TensorCores work when there are enough rows.
    if pl.cdiv(m, tm) < 2 and m > sublane:
        tm = _round_up(pl.cdiv(m, 2), sublane)
    return tm


def clip_image_encoder_adapter(x, w1, w2, *, ratio=0.6, block_rows=1024):
    """x: (..., c_in); w1: (c_in, hidden_p); w2: (hidden_p, c_in).

    Prefer passing weights already processed by `prepare_adapter_weights`
    (padding / dtype cast hoisted out of the per-call path); unpadded weights
    are handled here as a fallback.
    """
    orig_shape = x.shape
    c_in = orig_shape[-1]
    hidden_p = w1.shape[1]
    assert w1.shape == (c_in, hidden_p)
    assert w2.shape == (hidden_p, c_in)

    if hidden_p % 128 != 0:
        # Fallback: callers should pre-pad once via prepare_adapter_weights.
        w1, w2 = prepare_adapter_weights(w1, w2)
        hidden_p = w1.shape[1]

    if c_in < 128:
        # Tiny channel widths leave most of the 128-lane vreg idle and force
        # masked partial stores; let XLA fuse this case instead.
        xc = x.astype(w1.dtype)
        h = jnp.maximum(jnp.dot(xc, w1, preferred_element_type=jnp.float32), 0.0)
        y = jnp.dot(h.astype(w2.dtype), w2, preferred_element_type=jnp.float32)
        xf = x.astype(jnp.float32)
        return (xf + ratio * (y - xf)).astype(x.dtype)

    x2 = x.reshape(-1, c_in)                 # view; no HBM copy
    m = x2.shape[0]

    x_bytes = jnp.dtype(x.dtype).itemsize
    w_bytes = jnp.dtype(w1.dtype).itemsize
    sublane = 8 if x_bytes >= 4 else 16
    tm = _choose_row_tile(m, c_in, hidden_p, x_bytes, w_bytes, sublane, block_rows)
    num_tiles = pl.cdiv(m, tm)               # ragged last block handled by Pallas masking

    kernel = functools.partial(adapter_kernel, ratio=float(ratio))

    out = pl.pallas_call(
        kernel,
        out_shape=jax.ShapeDtypeStruct((m, c_in), x.dtype),
        grid=(num_tiles,),
        in_specs=[
            pl.BlockSpec((tm, c_in), lambda i: (i, 0)),        # activation row tile (streamed)
            pl.BlockSpec((c_in, hidden_p), lambda i: (0, 0)),  # W1, VMEM-resident
            pl.BlockSpec((hidden_p, c_in), lambda i: (0, 0)),  # W2, VMEM-resident
        ],
        out_specs=pl.BlockSpec((tm, c_in), lambda i: (i, 0)),
        compiler_params=pltpu.CompilerParams(
            # Row tiles are independent -> shard across both v7x TensorCores;
            # harmless on v5e/v6e (single TC).
            dimension_semantics=("parallel",),
            vmem_limit_bytes=_VMEM_LIMIT_BYTES,
        ),
    )(x2, w1, w2)

    return out.reshape(orig_shape)


def reference_adapter(x, w1, w2, *, ratio=0.6):
    """Plain-JAX (f32) reference matching the PyTorch module."""
    h = jnp.maximum(x @ w1, 0.0)
    y = h @ w2
    return ratio * y + (1 - ratio) * x


if __name__ == "__main__":
    # Small shapes consistent with the module: c_in=256, reduction=4 -> hidden=64.
    # seq=9 makes M=18 so the ragged last row block and the >=2-tile grid path
    # are both exercised.
    batch, seq, c_in, reduction = 2, 9, 256, 4
    hidden = c_in // reduction
    ratio = 0.6

    key = jax.random.PRNGKey(0)
    kx, k1, k2 = jax.random.split(key, 3)

    x = jax.random.normal(kx, (batch, seq, c_in), dtype=jnp.float32)
    # Deterministic synthetic weights (nn.Linear without bias), pre-transposed.
    w1 = jax.random.normal(k1, (c_in, hidden), dtype=jnp.float32) * 0.05
    w2 = jax.random.normal(k2, (hidden, c_in), dtype=jnp.float32) * 0.05

    ref = reference_adapter(x, w1, w2, ratio=ratio)

    # --- f32 MXU path: bit-faithful to the PyTorch module ------------------
    w1_f32, w2_f32 = prepare_adapter_weights(w1, w2)        # hoisted, one-time
    out_f32 = clip_image_encoder_adapter(x, w1_f32, w2_f32, ratio=ratio)
    out_f32 = jax.block_until_ready(out_f32)
    assert out_f32.shape == x.shape
    assert jnp.allclose(out_f32, ref, atol=1e-5, rtol=1e-5)

    # --- bf16 MXU path: bf16 operands, f32 accumulation / epilogue ----------
    w1_bf16, w2_bf16 = prepare_adapter_weights(w1, w2, compute_dtype=jnp.bfloat16)
    out_bf16 = clip_image_encoder_adapter(x, w1_bf16, w2_bf16, ratio=ratio)
    out_bf16 = jax.block_until_ready(out_bf16)
    assert out_bf16.shape == x.shape
    assert jnp.allclose(out_bf16, ref, atol=3e-2, rtol=3e-2)

    print("KERNEL_OK")
</pallas_src>

<mosaic_0001>
module attributes {stable_mosaic.version = 11 : i64} {
  func.func @adapter_kernel(%arg0: i32, %arg1: memref<16x256xf32, #tpu.memory_space<vmem>>, %arg2: memref<256x128xf32, #tpu.memory_space<vmem>>, %arg3: memref<128x256xf32, #tpu.memory_space<vmem>>, %arg4: memref<16x256xf32, #tpu.memory_space<vmem>>) attributes {dimension_semantics = [#tpu.dimension_semantics<parallel>], iteration_bounds = array<i64: 2>, scalar_prefetch = 0 : i64, scratch_operands = 0 : i64, tpu.core_type = #tpu.core_type<tc>, window_params = [{transform_indices = @transform_0, window_bounds = array<i64: 16, 256>}, {pipeline_mode = #tpu.pipeline_mode<synchronous>, transform_indices = @transform_1, window_bounds = array<i64: 256, 128>}, {pipeline_mode = #tpu.pipeline_mode<synchronous>, transform_indices = @transform_2, window_bounds = array<i64: 128, 256>}, {transform_indices = @transform_3, window_bounds = array<i64: 16, 256>}]} {
    %c0 = arith.constant 0 : index
    %c0_0 = arith.constant 0 : index
    %0 = vector.load %arg1[%c0, %c0_0] : memref<16x256xf32, #tpu.memory_space<vmem>>, vector<16x256xf32>
    %c0_1 = arith.constant 0 : index
    %c0_2 = arith.constant 0 : index
    %1 = vector.load %arg2[%c0_1, %c0_2] : memref<256x128xf32, #tpu.memory_space<vmem>>, vector<256x128xf32>
    %cst = arith.constant dense<0.000000e+00> : vector<16x128xf32>
    %2 = tpu.matmul %0, %1, %cst {dimension_numbers = #tpu.dot_dimension_numbers<[1], [0], [0], [1], [0, 0, 1, 1], [], []>} : vector<16x256xf32>, vector<256x128xf32>, vector<16x128xf32> -> vector<16x128xf32>
    %cst_3 = arith.constant 0.000000e+00 : f32
    %3 = vector.broadcast %cst_3 : f32 to vector<16x128xf32>
    %4 = arith.maximumf %2, %3 : vector<16x128xf32>
    %c0_4 = arith.constant 0 : index
    %c0_5 = arith.constant 0 : index
    %5 = vector.load %arg3[%c0_4, %c0_5] : memref<128x256xf32, #tpu.memory_space<vmem>>, vector<128x256xf32>
    %cst_6 = arith.constant dense<0.000000e+00> : vector<16x256xf32>
    %6 = tpu.matmul %4, %5, %cst_6 {dimension_numbers = #tpu.dot_dimension_numbers<[1], [0], [0], [1], [0, 0, 1, 1], [], []>} : vector<16x128xf32>, vector<128x256xf32>, vector<16x256xf32> -> vector<16x256xf32>
    %7 = arith.subf %6, %0 : vector<16x256xf32>
    %cst_7 = arith.constant 6.000000e-01 : f32
    %8 = vector.broadcast %cst_7 : f32 to vector<16x256xf32>
    %9 = arith.mulf %8, %7 : vector<16x256xf32>
    %10 = arith.addf %0, %9 : vector<16x256xf32>
    %c0_8 = arith.constant 0 : index
    %c0_9 = arith.constant 0 : index
    %11 = vector.load %arg4[%c0_8, %c0_9] : memref<16x256xf32, #tpu.memory_space<vmem>>, vector<16x256xf32>
    tpu.vector_store %arg4[%c0_8, %c0_9], %10 {strides = array<i32>} : memref<16x256xf32, #tpu.memory_space<vmem>>, vector<16x256xf32>,
    return
  }
  func.func @transform_0(%arg0: i32) -> (i32, i32) {
    %c0_i32 = arith.constant 0 : i32
    %c0_i32_0 = arith.constant 0 : i32
    return %arg0, %c0_i32 : i32, i32
  }
  func.func @transform_1(%arg0: i32) -> (i32, i32) {
    %c0_i32 = arith.constant 0 : i32
    %c0_i32_0 = arith.constant 0 : i32
    %c0_i32_1 = arith.constant 0 : i32
    return %c0_i32, %c0_i32_0 : i32, i32
  }
  func.func @transform_2(%arg0: i32) -> (i32, i32) {
    %c0_i32 = arith.constant 0 : i32
    %c0_i32_0 = arith.constant 0 : i32
    %c0_i32_1 = arith.constant 0 : i32
    return %c0_i32, %c0_i32_0 : i32, i32
  }
  func.func @transform_3(%arg0: i32) -> (i32, i32) {
    %c0_i32 = arith.constant 0 : i32
    %c0_i32_0 = arith.constant 0 : i32
    return %arg0, %c0_i32 : i32, i32
  }
}

</mosaic_0001>

<bundles_post_ra>
// kernel: tpu_custom_call.1
= control target key start
LH: loop header
LB: loop body
LE: loop exit
PB: predicated region body
PF: predicated region fallthrough
CT: control target
= control target key end

     0   :  { %8 = vsyncpa [#allocation3], 0  ;;  %s1246_s0 = inlined_call_operand.hbm [shape: f32[18,256], index: 0, kind: input, shape index: {}]   ;;  %s1247_s1 = inlined_call_operand.hbm [shape: f32[256,128], index: 1, kind: input, shape index: {}]   ;;  %s1248_s2 = inlined_call_operand.hbm [shape: f32[128,256], index: 2, kind: input, shape index: {}]   ;;  %s1249_s3 = inlined_call_operand.hbm [shape: f32[18,256], index: 3, kind: output, shape index: {}]  }
   0x1   :  { %10 = vsyncpa [#allocation3 + $0x1], 0 }
   0x2   :  { %11 = vsyncpa [#allocation6], 0 }
   0x3   :  { %12 = vsyncpa [#allocation4], 0 }
   0x4   :  { %14 = vsyncpa [#allocation4 + $0x1], 0  ;;  %s986_s12 = smov 0   ;;  %s988_s13 = smov 0  }
   0x5   :  { %s990_s14 = smov 0   ;;  %s992_s15 = smov 0  }
   0x6 LB: > { %s1007_s16 = sadd.s32 4294967295, %s951_s15   ;;  %s590_s17 = sadd.s32 4294967294, %s951_s15   ;;  %s951_s15 = sphi %s992_s15, %s1269_s15   ;;  %s947_s14 = sphi %s990_s14, %s1268_s14   ;;  %s943_s13 = sphi %s988_s13, %s1267_s13   ;;  %s939_s12 = sphi %s986_s12, %s1266_s12  }
   0x7   : > { %s1011_s18 = sadd.s32 1, %s951_s15   ;;  %s27_s19 = sadd.s32 1, %s947_s14 }
   0x8   : > { %s24_s20 = ssub.s32 %s951_s15, %s1011_s18  ;;  %p34_p0 = scmp.ne.s32.totalorder %s947_s14, %s943_s13 }
   0x9   : > { %p25_p1 = scmp.eq.s32.totalorder %s24_s20, 0  ;;  %p35_p2 = scmp.eq.s32.totalorder %s951_s15, 0 }
   0xa   : > { %p40_p3 = scmp.ne.s32.totalorder %s943_s13, %s939_s12  ;;  %p1250_p4 = scmp.eq.s32.totalorder %s1007_s16, 0 }
   0xb   : > { %s1023_s21 = scalar_select %p25_p1, %s947_s14, %s27_s19  }
   0xc   : > { %p1025_p5 = por %p35_p2, %p34_p0  ;;  %p1031_p6 = por %p1250_p4, %p40_p3 }
   0xd   : > { %p106_p7 = scmp.eq.s32.totalorder %s1007_s16, 1  ;;  %p112_p8 = scmp.eq.s32.totalorder %s590_s17, 1 }
   0xe   : > { %s1253_s22 = scalar_select %p1025_p5, 1, 0 }
   0xf   : > { %s1254_s23 = scalar_select %p1031_p6, 1, 0 }
  0x10   : > { %p591_p9 = scmp.ge.s32.totalorder %s951_s15, 1  ;;  %p119_p10 = scmp.lt.s32.totalorder %s951_s15, 3 }
  0x11   : > { %p1038_p11 = por %p106_p7, %p34_p0  ;;  %p1042_p12 = por %p112_p8, %p40_p3 }
  0x12   : > { %p1046_p13 = pnand %p591_p9, %p119_p10  ;;  %s953_s27 = smov [#allocation5]  }
  0x13   : > { %s1255_s24 = scalar_select %p1038_p11, 1, 0 }
  0x14   : > { %s1256_s25 = scalar_select %p1042_p12, 1, 0 }
  0x15   : > { %s1257_s26 = scalar_select %p1046_p13, 1, 0 }
  0x16   : > { %p738_p1 = pneg %p1046_p13  ;;  %s131_s28 = sshll.u32 %s953_s27, 4  ;;  %s132_s28 = int_to_ptr.vmem [resolvable:$true] %s131_s28 }
  0x17   : > { %s954_s30 = smov [#allocation7]   ;;  %s797_s7 = scalar_lea.hbm %s1247_s1, 4096 }
  0x18   : > { %p1054_p2 = pnand %p738_p1, %p1250_p4  ;;  %s144_s4 = sshll.u32 %s954_s30, 4  ;;  %s1058_s4 = int_to_ptr.vmem [resolvable:$true] %s144_s4 }
  0x19   : > { %p798_p0 = scmp.ne.s32.totalorder %s1247_s1, %s797_s7  ;;  %p804_p9 = scmp.lt.u32.totalorder %s797_s7, %s1247_s1 }
  0x1a   : > { %p799_p3 = pneg %p1054_p2 }
  0x1c   : > { %p800_p7 = pnand %p799_p3, %p798_p0 }
  0x1e   : > { %p801_p8 = pneg %p800_p7 }
  0x20   : > { %p806_p10 = pnand %p804_p9, %p801_p8 }
  0x22   : > { %809 = shalt.err (!%p806_p10)
}
  0x23   : > { %s810_s17 = scalar_lea.vmem %s132_s28, 4096  ;;  %p818_p11 = scmp.lt.s32.totalorder %s132_s28, %s132_s28 }
  0x24   : > { %p811_p1 = scmp.ne.s32.totalorder %s132_s28, %s810_s17  ;;  %p819_p6 = scmp.lt.s32.totalorder %s810_s17, %s810_s17 }
  0x26   : > { %p813_p4 = pnand %p811_p1, %p799_p3  ;;  %p820_p13 = por %p819_p6, %p818_p11 }
  0x28   : > { %p814_p12 = pneg %p813_p4 }
  0x2a   : > { %p821_p5 = pnand %p820_p13, %p814_p12 }
  0x2c   : > { %824 = shalt.err (!%p821_p5)
}
  0x2d   : > { %s955_s19 = smov 128   ;;  %s956_s20 = smov 8  }
  0x2e   : > { %741 = dma.hbm_to_vmem [thread:$0]  (!%p1054_p2), %s1247_s1, 4096, %s132_s28, [#allocation6], %s955_s19, %s955_s19, %s956_s20  }
  0x2f   : > { %s825_s7 = scalar_lea.hbm %s1248_s2, 4096 }
  0x30   : > { %p826_p4 = scmp.ne.s32.totalorder %s1248_s2, %s825_s7  ;;  %p832_p11 = scmp.lt.u32.totalorder %s825_s7, %s1248_s2 }
  0x32   : > { %p828_p5 = pnand %p826_p4, %p799_p3 }
  0x34   : > { %p829_p6 = pneg %p828_p5 }
  0x36   : > { %p834_p12 = pnand %p832_p11, %p829_p6 }
  0x38   : > { %837 = shalt.err (!%p834_p12)
}
  0x39   : > { %s838_s28 = scalar_lea.vmem %s1058_s4, 4096  ;;  %p846_p8 = scmp.lt.s32.totalorder %s1058_s4, %s1058_s4 }
  0x3a   : > { %p839_p13 = scmp.ne.s32.totalorder %s1058_s4, %s838_s28  ;;  %p847_p9 = scmp.lt.s32.totalorder %s838_s28, %s838_s28 }
  0x3c   : > { %p841_p0 = pnand %p839_p13, %p799_p3  ;;  %p848_p10 = por %p847_p9, %p846_p8 }
  0x3e   : > { %p842_p7 = pneg %p841_p0 }
  0x40   : > { %p849_p1 = pnand %p848_p10, %p842_p7 }
  0x42   : > { %852 = shalt.err (!%p849_p1)
}
  0x43   : > { %s957_s17 = smov 256   ;;  %s958_s19 = smov 16  }
  0x44   : > { %744 = dma.hbm_to_vmem [thread:$0]  (!%p1054_p2), %s1248_s2, 4096, %s1058_s4, [#allocation6], %s957_s17, %s957_s17, %s958_s19  }
  0x45   : > { %p594_p4 = scmp.ge.s32.totalorder %s951_s15, 2 }
  0x46   : > { %p1259_p3 = scmp.ne.s32.totalorder (!%p594_p4), %s1253_s22, 0 }
  0x47   : > { %154 = sbr.rel (%p594_p4) target bundleno = 113 (0x71), region = 24 }
  0x4e   : > { %157 = sbr.rel (!%p1259_p3) target bundleno = 113 (0x71), region = 28  ;;  %s158_s30 = sand.u32 (%p1259_p3), 1, %s947_s14  }
  0x4f   : > { %s596_s5 = sshll.u32 (%p1259_p3), %s951_s15, 1  ;;  %s595_s6 = sshll.u32 (%p1259_p3), %s158_s30, 5 }
  0x50   : > { %s164_s7 = ssub.s32 (%p1259_p3), 3, %s596_s5  ;;  %s1117_s8 = scalar_lea.sflag (%p1259_p3), [#allocation3], %s158_s30 }
  0x51   : > { %p165_p5 = scmp.lt.s32.totalorder (%p1259_p3), %s164_s7, 2  ;;  %s162_s9 = scalar_lea.vmem (%p1259_p3), [#allocation2], %s595_s6 }
  0x55   : > { %s1271_s7 = smov (!%p165_p5, %s164_s7), 2 }
  0x56   : > { %s1114_s29 = sshll.u32 %s1271_s7, 8 }
  0x57   : > { %s170_s4 = ssub.s32 512, %s1114_s29 }
  0x58   : > { %171 = vsyncadd %s1117_s8, %s170_s4  ;;  %p599_p2 = scmp.ne.s32.totalorder %s1114_s29, 0  ;;  %s622_s22 = sshll.u32 %s951_s15, 9 }
  0x59   : > { %s1125_s28 = scalar_lea.hbm %s1246_s0, %s622_s22  ;;  %s177_s17 = sshll.u32 %s162_s9, 4  ;;  %s1127_s17 = int_to_ptr.vmem [resolvable:$true] %s177_s17 }
  0x5a   : > { %s853_s19 = scalar_lea.hbm %s1125_s28, %s1114_s29  ;;  %s857_s30 = scalar_lea.hbm %s1246_s0, 768 }
  0x5b   : > { %p854_p6 = scmp.ne.s32.totalorder %s1125_s28, %s853_s19  ;;  %p858_p13 = scmp.lt.u32.totalorder %s1125_s28, %s1246_s0 }
  0x5c   : > { %p859_p0 = scmp.lt.u32.totalorder %s857_s30, %s853_s19  ;;  %p861_p8 = scmp.lt.u32.totalorder %s853_s19, %s1125_s28 }
  0x5d   : > { %p855_p11 = pnand %p854_p6, %p599_p2 }
  0x5e   : > { %p860_p7 = por %p859_p0, %p858_p13 }
  0x5f   : > { %p856_p12 = pneg %p855_p11 }
  0x60   : > { %p862_p9 = por %p861_p8, %p860_p7 }
  0x62   : > { %p863_p10 = pnand %p862_p9, %p856_p12 }
  0x64   : > { %866 = shalt.err (!%p863_p10)
}
  0x65   : > { %s867_s7 = scalar_lea.vmem %s1127_s17, %s1114_s29  ;;  %s959_s4 = smov [#allocation2]  }
  0x66   : > { %p868_p1 = scmp.ne.s32.totalorder %s1127_s17, %s867_s7  ;;  %s871_s9 = sshll.u32 %s959_s4, 4  ;;  %s872_s9 = int_to_ptr.vmem [resolvable:$false] %s871_s9 }
  0x67   : > { %s873_s22 = scalar_lea.vmem %s872_s9, 1024  ;;  %p874_p6 = scmp.lt.s32.totalorder %s1127_s17, %s872_s9 }
  0x68   : > { %p869_p3 = pnand %p868_p1, %p599_p2  ;;  %p875_p11 = scmp.lt.s32.totalorder %s873_s22, %s867_s7 }
  0x6a   : > { %p870_p5 = pneg %p869_p3  ;;  %p876_p13 = por %p875_p11, %p874_p6 }
  0x6c   : > { %p877_p0 = pnand %p876_p13, %p870_p5 }
  0x6e   : > { %880 = shalt.err (!%p877_p0)
}
  0x6f   : > { %s960_s10 = smov 256   ;;  %s961_s11 = smov 16  }
  0x70   : > { %183 = dma.hbm_to_vmem [thread:$0]  (%p599_p2), %s1125_s28, %s1114_s29, %s1127_s17, %s1117_s8, %s960_s10, %s960_s10, %s961_s11  }
  0x71 PF: > { %p1260_p12 = scmp.ne.s32.totalorder %s1257_s26, 0 }
  0x72   : > { %s1157_s19 = sand.u32 (!%p1260_p12), 1, %s943_s13   ;;  %p1261_p7 = scmp.ne.s32.totalorder (!%p1260_p12), %s1254_s23, 0 }
  0x73   : > { %189 = sbr.rel (%p1260_p12) target bundleno = 630 (0x276), region = 32  ;;  %s605_s20 = sshll.u32 (!%p1260_p12), %s1157_s19, 5 }
  0x74   : > { %s192_s27 = scalar_lea.sflag (!%p1260_p12), [#allocation3], %s1157_s19  ;;  %s1163_s30 = scalar_lea.vmem (!%p1260_p12), [#allocation2], %s605_s20 }
  0x7a   : > { %926 = dma.done.wait (%p1261_p7), %s192_s27, 512  }
  0x7b   : > { %928 = vsyncadd (%p1261_p7), %s192_s27, 4294966784  ;;  %p1262_p2 = scmp.eq.s32.totalorder %s1007_s16, 0 }
  0x7d   : > { %930 = dma.done.wait (%p1262_p2), [#allocation6], 8192   ;;  %p1263_p8 = pmov %p1262_p2 }
  0x7e   : > { %v258_v0 = vld [vmem:[#allocation5 + $0x80] sm:$0xff]  ;;  %v259_v1 = vld [vmem:[#allocation5 + $0x88] sm:$0xff]  ;;  %v260_v5 = vld [vmem:[#allocation5 + $0x90] sm:$0xff]  ;;  %s225_s23 = scalar_lea.vmem [#allocation8], %s605_s20  ;;  %s477_s26 = scalar_lea.sflag [#allocation4], %s1157_s19 }
  0x7f   : > { %932 = vsyncadd (%p1263_p8), [#allocation6], 4294959104  ;;  %v242_v2 = vld [vmem:[#allocation5] sm:$0xff]  ;;  %v664_v3 = vpack.c.bf16 %v259_v1, %v258_v0  ;;  %v243_v4 = vld [vmem:[#allocation5 + $0x8] sm:$0xff]  ;;  %p1264_p9 = scmp.ne.s32.totalorder %s1255_s24, 0 }
  0x80   : > { %v261_v6 = vld [vmem:[#allocation5 + $0x98] sm:$0xff]  ;;  %v666_v7 = vpack.c.bf16 %v243_v4, %v242_v2  ;;  %v244_v9 = vld [vmem:[#allocation5 + $0x10] sm:$0xff]  ;;  %v262_v11 = vld [vmem:[#allocation5 + $0xa0] sm:$0xff]  ;;  %s610_s29 = sshll.u32 (%p1264_p9), %s1007_s16, 1 }
  0x81   : > { %v668_v8 = vpack.c.bf16 %v261_v6, %v260_v5  ;;  %v245_v10 = vld [vmem:[#allocation5 + $0x18] sm:$0xff]  ;;  %665 = vmatprep.subr.bf16.mxu0 %v664_v3  ;;  %v263_v12 = vld [vmem:[#allocation5 + $0xa8] sm:$0xff]  ;;  %v246_v15 = vld [vmem:[#allocation5 + $0x20] sm:$0xff]  ;;  %s485_s8 = ssub.s32 (%p1264_p9), 3, %s610_s29 }
  0x82   : > { %667 = vmatpush3.bf16.msra.mxu0 %v666_v7  ;;  %v670_v13 = vpack.c.bf16 %v245_v10, %v244_v9  ;;  %v672_v14 = vpack.c.bf16 %v263_v12, %v262_v11  ;;  %v247_v16 = vld [vmem:[#allocation5 + $0x28] sm:$0xff]  ;;  %v264_v17 = vld [vmem:[#allocation5 + $0xb0] sm:$0xff]  ;;  %v265_v18 = vld [vmem:[#allocation5 + $0xb8] sm:$0xff]  ;;  %p486_p10 = scmp.lt.s32.totalorder (%p1264_p9), %s485_s8, 2 }
  0x83   : > { %669 = vmatprep.subr.bf16.mxu0 %v668_v8  ;;  %v674_v19 = vpack.c.bf16 %v247_v16, %v246_v15  ;;  %v676_v20 = vpack.c.bf16 %v265_v18, %v264_v17  ;;  %v248_v21 = vld [vmem:[#allocation5 + $0x30] sm:$0xff]  ;;  %v249_v22 = vld [vmem:[#allocation5 + $0x38] sm:$0xff]  ;;  %v266_v23 = vld [vmem:[#allocation5 + $0xc0] sm:$0xff] }
  0x84   : > { %v267_v24 = vld [vmem:[#allocation5 + $0xc8] sm:$0xff]  ;;  %v250_v26 = vld [vmem:[#allocation5 + $0x40] sm:$0xff]  ;;  %v678_v28 = vpack.c.bf16 %v249_v22, %v248_v21  ;;  %v268_v29 = vld [vmem:[#allocation5 + $0xd0] sm:$0xff] }
  0x85   : > { %v1174_v25 = vld [vmem:[%s1163_s30 + $0x8] sm:$0xff]  ;;  %v269_v30 = vld [vmem:[#allocation5 + $0xd8] sm:$0xff]  ;;  %v351_v33 = vld [vmem:[#allocation7] sm:$0xff]  ;;  %v680_v34 = vpack.c.bf16 %v267_v24, %v266_v23 }
  0x86   : > { %671 = vmatpush3.bf16.msra.mxu0 %v670_v13  ;;  %v251_v27 = vld [vmem:[#allocation5 + $0x48] sm:$0xff]  ;;  %338 = vmatprep.mubr.f32.mxu0 %v1174_v25  ;;  %v354_v32 = vld [vmem:[#allocation7 + $0x18] sm:$0xff]  ;;  %v353_v36 = vld [vmem:[#allocation7 + $0x10] sm:$0xff]  ;;  %v684_v49 = vpack.c.bf16 %v269_v30, %v268_v29 }
  0x87   : > { %673 = vmatprep.subr.bf16.mxu0 %v672_v14  ;;  %v352_v31 = vld [vmem:[#allocation7 + $0x8] sm:$0xff]  ;;  %v358_v38 = vld [vmem:[#allocation7 + $0x38] sm:$0xff]  ;;  %v698_v39 = vpack.c.bf16 %v353_v36, %v351_v33  ;;  %v355_v41 = vld [vmem:[#allocation7 + $0x20] sm:$0xff]  ;;  %v682_v45 = vpack.c.bf16 %v251_v27, %v250_v26 }
  0x88   : > { %v696_v35 = vpack.c.bf16 %v354_v32, %v352_v31  ;;  %v356_v37 = vld [vmem:[#allocation7 + $0x28] sm:$0xff]  ;;  %v357_v42 = vld [vmem:[#allocation7 + $0x30] sm:$0xff]  ;;  %v362_v44 = vld [vmem:[#allocation7 + $0x58] sm:$0xff] }
  0x89   : > { %v700_v40 = vpack.c.bf16 %v358_v38, %v356_v37  ;;  %v360_v43 = vld [vmem:[#allocation7 + $0x48] sm:$0xff]  ;;  %v252_v46 = vld [vmem:[#allocation5 + $0x50] sm:$0xff]  ;;  %v253_v47 = vld [vmem:[#allocation5 + $0x58] sm:$0xff]  ;;  %v702_v48 = vpack.c.bf16 %v357_v42, %v355_v41  ;;  %v962_v37 = vmov 0.0  }
  0x8a   : > { %675 = vmatpush3.bf16.msra.mxu0 %v674_v19  ;;  %697 = vmatprep.subr.bf16.mxu1 %v696_v35  ;;  %v270_v50 = vld [vmem:[#allocation5 + $0xe0] sm:$0xff]  ;;  %v704_v51 = vpack.c.bf16 %v362_v44, %v360_v43  ;;  %v361_v53 = vld [vmem:[#allocation7 + $0x50] sm:$0xff]  ;;  %v271_v54 = vld [vmem:[#allocation5 + $0xe8] sm:$0xff]  ;;  %v686_v57 = vpack.c.bf16 %v253_v47, %v252_v46 }
  0x8b   : > { %677 = vmatprep.subr.bf16.mxu0 %v676_v20  ;;  %699 = vmatpush1.bf16.msra.mxu1 %v698_v39  ;;  %v359_v52 = vld [vmem:[#allocation7 + $0x40] sm:$0xff]  ;;  %v364_v55 = vld [vmem:[#allocation7 + $0x68] sm:$0xff]  ;;  %v366_v56 = vld [vmem:[#allocation7 + $0x78] sm:$0xff]  ;;  %v688_v61 = vpack.c.bf16 %v271_v54, %v270_v50 }
  0x8c   : > { %701 = vmatprep.subr.bf16.mxu1 %v700_v40  ;;  %v254_v58 = vld [vmem:[#allocation5 + $0x60] sm:$0xff]  ;;  %v255_v59 = vld [vmem:[#allocation5 + $0x68] sm:$0xff]  ;;  %v706_v60 = vpack.c.bf16 %v361_v53, %v359_v52  ;;  %v272_v62 = vld [vmem:[#allocation5 + $0xf0] sm:$0xff]  ;;  %v708_v63 = vpack.c.bf16 %v366_v56, %v364_v55  ;;  %447 = vmatprep.mubr.f32.mxu1 %v962_v37 }
  0x8d   : > { %v363_v0 = vld [vmem:[#allocation7 + $0x60] sm:$0xff]  ;;  %v365_v1 = vld [vmem:[#allocation7 + $0x70] sm:$0xff]  ;;  %v273_v2 = vld [vmem:[#allocation5 + $0xf8] sm:$0xff]  ;;  %v690_v5 = vpack.c.bf16 %v255_v59, %v254_v58 }
  0x8e   : > { %679 = vmatpush3.bf16.msra.mxu0 %v678_v28  ;;  %v368_v3 = vld [vmem:[#allocation7 + $0x88] sm:$0xff]  ;;  %v370_v4 = vld [vmem:[#allocation7 + $0x98] sm:$0xff]  ;;  %v256_v6 = vld [vmem:[#allocation5 + $0x70] sm:$0xff]  ;;  %v710_v7 = vpack.c.bf16 %v365_v1, %v363_v0  ;;  %v692_v8 = vpack.c.bf16 %v273_v2, %v272_v62 }
  0x8f   : > { %681 = vmatprep.subr.bf16.mxu0 %v680_v34  ;;  %703 = vmatpush1.bf16.msra.mxu1 %v702_v48  ;;  %v257_v9 = vld [vmem:[#allocation5 + $0x78] sm:$0xff]  ;;  %v712_v10 = vpack.c.bf16 %v370_v4, %v368_v3  ;;  %v367_v11 = vld [vmem:[#allocation7 + $0x80] sm:$0xff]  ;;  %v369_v12 = vld [vmem:[#allocation7 + $0x90] sm:$0xff] }
  0x90   : > { %705 = vmatprep.subr.bf16.mxu1 %v704_v51  ;;  %v372_v13 = vld [vmem:[#allocation7 + $0xa8] sm:$0xff]  ;;  %v374_v14 = vld [vmem:[#allocation7 + $0xb8] sm:$0xff]  ;;  %v694_v15 = vpack.c.bf16 %v257_v9, %v256_v6  ;;  %v714_v16 = vpack.c.bf16 %v369_v12, %v367_v11  ;;  %v371_v18 = vld [vmem:[#allocation7 + $0xa0] sm:$0xff] }
  0x91   : > { %v716_v17 = vpack.c.bf16 %v374_v14, %v372_v13  ;;  %v373_v19 = vld [vmem:[#allocation7 + $0xb0] sm:$0xff]  ;;  %v376_v20 = vld [vmem:[#allocation7 + $0xc8] sm:$0xff]  ;;  %v378_v21 = vld [vmem:[#allocation7 + $0xd8] sm:$0xff] }
  0x92   : > { %683 = vmatpush3.bf16.msra.mxu0 %v682_v45  ;;  %v238_v22 = vld [vmem:[%s1163_s30] sm:$0xff]  ;;  %v718_v23 = vpack.c.bf16 %v373_v19, %v371_v18  ;;  %v241_v24 = vld [vmem:[%s1163_s30 + $0x18] sm:$0xff]  ;;  %v720_v26 = vpack.c.bf16 %v378_v21, %v376_v20  ;;  %v377_v28 = vld [vmem:[#allocation7 + $0xd0] sm:$0xff] }
  0x93   : > { %685 = vmatprep.subr.bf16.mxu0 %v684_v49  ;;  %707 = vmatpush1.bf16.msra.mxu1 %v706_v60  ;;  %v375_v27 = vld [vmem:[#allocation7 + $0xc0] sm:$0xff]  ;;  %v240_v29 = vld [vmem:[%s1163_s30 + $0x10] sm:$0xff]  ;;  %v380_v31 = vld [vmem:[#allocation7 + $0xe8] sm:$0xff] }
  0x94   : > { %709 = vmatprep.subr.bf16.mxu1 %v708_v63  ;;  %v722_v30 = vpack.c.bf16 %v377_v28, %v375_v27  ;;  %v382_v32 = vld [vmem:[#allocation7 + $0xf8] sm:$0xff]  ;;  %v379_v34 = vld [vmem:[#allocation7 + $0xe0] sm:$0xff]  ;;  %v381_v35 = vld [vmem:[#allocation7 + $0xf0] sm:$0xff] }
  0x95   : > { %v724_v33 = vpack.c.bf16 %v382_v32, %v380_v31  ;;  %v726_v36 = vpack.c.bf16 %v381_v35, %v379_v34 }
  0x96   : > { %687 = vmatpush3.bf16.msra.mxu0 %v686_v57 }
  0x97   : > { %689 = vmatprep.subr.bf16.mxu0 %v688_v61  ;;  %711 = vmatpush1.bf16.msra.mxu1 %v710_v7 }
  0x98   : > { %713 = vmatprep.subr.bf16.mxu1 %v712_v10 }
  0x9a   : > { %691 = vmatpush3.bf16.msra.mxu0 %v690_v5 }
  0x9b   : > { %693 = vmatprep.subr.bf16.mxu0 %v692_v8  ;;  %715 = vmatpush1.bf16.msra.mxu1 %v714_v16 }
  0x9c   : > { %717 = vmatprep.subr.bf16.mxu1 %v716_v17 }
  0x9e   : > { %695 = vmatpush3.bf16.msra.mxu0 %v694_v15 }
  0x9f   : > { %719 = vmatpush1.bf16.msra.mxu1 %v718_v23 }
  0xa0   : > { %721 = vmatprep.subr.bf16.mxu1 %v720_v26 }
  0xa1   : > { %339 = vmatmul.mubr.f32.vlgmr.msra.gmra.mrb[0].mxu0 %v238_v22 }
  0xa2   : > { %343 = vmatprep.mubr.f32.mxu0 %v241_v24 }
  0xa3   : > { %723 = vmatpush1.bf16.msra.mxu1 %v722_v30 }
  0xa4   : > { %725 = vmatprep.subr.bf16.mxu1 %v724_v33 }
  0xa5   : > { %344 = vmatmul.mubr.f32.gmra.mrb[2].mxu0 %v240_v29 }
  0xa7   : > { %727 = vmatpush1.bf16.msra.mxu1 %v726_v36 }
 0x174   : > { %v658_v38 = vpop.f32.mrb[0].mxu0 }
 0x175   : > { %v659_v39 = vpop.f32.mrb[1].mxu0 }
 0x176   : > { %v660_v40 = vadd.f32 %v659_v39, %v658_v38 }
 0x178   : > { %v349_v41 = vmax.f32 %v660_v40, 0.0  ;;  %v661_v42 = vpop.f32.mrb[2].mxu0 }
 0x179   : > { %v662_v43 = vpop.f32.mrb[3].mxu0 }
 0x17a   : > { %v663_v44 = vadd.f32 %v662_v43, %v661_v42  ;;  %448 = vmatmul.mubr.f32.vlgmr.msra.gmra.mrb[0].mxu1 %v349_v41 }
 0x17b   : > { %453 = vmatprep.mubr.f32.mxu1 %v962_v37 }
 0x17c   : > { %v350_v45 = vmax.f32 %v663_v44, 0.0 }
 0x17e   : > { %454 = vmatmul.mubr.f32.gmra.mrb[2].mxu1 %v350_v45 }
 0x24d   : > { %v449_v46 = vpop.f32.mrb[0].mxu1 }
 0x24e   : > { %v460_v47 = vsub.f32 %v449_v46, %v238_v22  ;;  %v451_v48 = vpop.f32.mrb[1].mxu1 }
 0x24f   : > { %v461_v49 = vsub.f32 %v451_v48, %v1174_v25 }
 0x250   : > { %v464_v50 = vmul.f32 0.6, %v460_v47 }
 0x251   : > { %v465_v51 = vmul.f32 0.6, %v461_v49  ;;  %v455_v52 = vpop.f32.mrb[2].mxu1 }
 0x252   : > { %v468_v53 = vadd.f32 %v464_v50, %v238_v22  ;;  %v462_v54 = vsub.f32 %v455_v52, %v240_v29  ;;  %v457_v55 = vpop.f32.mrb[3].mxu1 }
 0x253   : > { %v469_v56 = vadd.f32 %v465_v51, %v1174_v25  ;;  %v463_v57 = vsub.f32 %v457_v55, %v241_v24  ;;  %483 = sbr.rel (!%p1264_p9) target bundleno = 630 (0x276), region = 48 }
 0x254   : > { %472 = vst [vmem:[%s225_s23] sm:$0xff] %v468_v53  ;;  %v466_v58 = vmul.f32 0.6, %v462_v54 }
 0x255   : > { %473 = vst [vmem:[%s225_s23 + $0x8] sm:$0xff] %v469_v56  ;;  %v467_v59 = vmul.f32 0.6, %v463_v57 }
 0x256   : > { %v470_v60 = vadd.f32 %v466_v58, %v240_v29 }
 0x257   : > { %v471_v61 = vadd.f32 %v467_v59, %v241_v24 }
 0x258   : > { %474 = vst [vmem:[%s225_s23 + $0x10] sm:$0xff] %v470_v60 }
 0x259   : > { %475 = vst [vmem:[%s225_s23 + $0x18] sm:$0xff] %v471_v61 }
 0x25a   : > { %s1273_s8 = smov (!%p486_p10, %s485_s8), 2 }
 0x25b   : > { %s1188_s28 = sshll.u32 %s1273_s8, 8 }
 0x25c   : > { %s491_s17 = ssub.s32 512, %s1188_s28 }
 0x25d   : > { %492 = vsyncadd %s477_s26, %s491_s17  ;;  %p613_p1 = scmp.ne.s32.totalorder %s1188_s28, 0  ;;  %s625_s5 = sshll.u32 %s1007_s16, 9 }
 0x25e   : > { %s1198_s7 = scalar_lea.hbm %s1249_s3, %s625_s5  ;;  %s498_s4 = sshll.u32 %s225_s23, 4  ;;  %s1200_s4 = int_to_ptr.vmem [resolvable:$true] %s498_s4 }
 0x25f   : > { %s881_s9 = scalar_lea.vmem %s1200_s4, %s1188_s28  ;;  %s963_s22 = smov [#allocation8]  }
 0x260   : > { %p882_p3 = scmp.ne.s32.totalorder %s1200_s4, %s881_s9  ;;  %s885_s10 = sshll.u32 %s963_s22, 4  ;;  %s886_s10 = int_to_ptr.vmem [resolvable:$false] %s885_s10 }
 0x261   : > { %s887_s16 = scalar_lea.vmem %s886_s10, 1024  ;;  %p888_p11 = scmp.lt.s32.totalorder %s1200_s4, %s886_s10 }
 0x262   : > { %p883_p5 = pnand %p882_p3, %p613_p1  ;;  %p889_p13 = scmp.lt.s32.totalorder %s887_s16, %s881_s9 }
 0x264   : > { %p884_p6 = pneg %p883_p5  ;;  %p890_p0 = por %p889_p13, %p888_p11 }
 0x266   : > { %p891_p12 = pnand %p890_p0, %p884_p6 }
 0x268   : > { %894 = shalt.err (!%p891_p12)
}
 0x269   : > { %s895_s11 = scalar_lea.hbm %s1198_s7, %s1188_s28  ;;  %s899_s30 = scalar_lea.hbm %s1249_s3, 768 }
 0x26a   : > { %p896_p7 = scmp.ne.s32.totalorder %s1198_s7, %s895_s11  ;;  %p900_p9 = scmp.lt.u32.totalorder %s1198_s7, %s1249_s3 }
 0x26b   : > { %p901_p10 = scmp.lt.u32.totalorder %s899_s30, %s895_s11  ;;  %p903_p5 = scmp.lt.u32.totalorder %s895_s11, %s1198_s7 }
 0x26c   : > { %p897_p2 = pnand %p896_p7, %p613_p1 }
 0x26d   : > { %p902_p3 = por %p901_p10, %p900_p9 }
 0x26e   : > { %p898_p8 = pneg %p897_p2 }
 0x26f   : > { %p904_p6 = por %p903_p5, %p902_p3 }
 0x271   : > { %p905_p11 = pnand %p904_p6, %p898_p8 }
 0x273   : > { %908 = shalt.err (!%p905_p11)
}
 0x274   : > { %s964_s8 = smov 256   ;;  %s965_s17 = smov 16  }
 0x275   : > { %504 = dma.vmem_to_hbm [thread:$0]  (%p613_p1), %s1200_s4, %s1188_s28, %s1198_s7, %s477_s26, %s964_s8, %s964_s8, %s965_s17  }
 0x276 PF: > { %s513_s5 = sand.u32 1, %s939_s12   ;;  %p1265_p13 = scmp.ne.s32.totalorder %s1256_s25, 0 }
 0x277   : > { %s514_s24 = scalar_lea.sflag [#allocation4], %s513_s5 }
 0x278   : > { %p746_p0 = pnand %p594_p4, %p1265_p13 }
 0x27a   : > { %934 = dma.done.wait (!%p746_p0), %s514_s24, 512  }
 0x27b   : > { %936 = vsyncadd (!%p746_p0), %s514_s24, 4294966784  ;;  %p17_p12 = scmp.ge.s32.totalorder %s1011_s18, 4   ;;  %s1266_s12 = smov %s943_s13 }
 0x27c   : > { %s1267_s13 = smov %s947_s14  ;;  %s1268_s14 = smov %s1023_s21 }
 0x27d   : > { %s1269_s15 = smov %s1011_s18  ;;  %19 = sbr.rel (!%p17_p12) target bundleno = 6 (0x6), region = 85 }
 0x284   :  { %519 = vsyncpa [#allocation3], 1 }
 0x285   :  { %521 = vsyncpa [#allocation3 + $0x1], 1 }
 0x286   :  { %522 = vsyncpa [#allocation6], 1 }
 0x287   :  { %523 = vsyncpa [#allocation4], 1 }
 0x288   :  { %525 = vsyncpa [#allocation4 + $0x1], 1 }

</bundles_post_ra>
